<compile_context>
chip_gen: v7x
topology: tpu7x:2x2x1
jax: 0.10.0
libtpu: 0.0.40
codegen_flags: <defaults>
</compile_context>

<pallas_src>
import functools

import jax
import jax.numpy as jnp
from jax.experimental import pallas as pl
from jax.experimental.pallas import tpu as pltpu


def _round_up(x: int, m: int) -> int:
    return (x + m - 1) // m * m


def _proj_kernel(a_ref, w_ref, b_ref, o_ref):
    """One (tm, N) output stripe.

    K and N are fully VMEM-resident, so this is a single bf16 MXU matmul with
    f32 accumulation and a fused f32 bias-add epilogue (no scratch, no
    reduction grid axis).
    """
    acc = jnp.dot(a_ref[...], w_ref[...], preferred_element_type=jnp.float32)
    o_ref[...] = (acc + b_ref[...]).astype(o_ref.dtype)


def _proj_matmul(a, w, bias, *, out_dtype, tm_cap=512):
    """out = a @ w + bias.

    a: (M, K) bf16, w: (K, N) bf16, bias: (N,) f32  -> (M, N) out_dtype.
    Weight + bias are VMEM-resident; only M is tiled.
    """
    M, K = a.shape
    _, N = w.shape

    # tm: multiple of 8 (sublane).  K/N are full-extent blocks, so they need
    # no 128 alignment or padding.
    tm = min(tm_cap, _round_up(M, 8))
    # Prefer >= 2 grid steps on non-trivial M so both v7x TensorCores get work
    # (the M axis is marked "parallel").
    if tm > 8 and _round_up(M, tm) // tm < 2:
        tm = max(8, _round_up((M + 1) // 2, 8))

    Mp = _round_up(M, tm)
    if Mp != M:  # only the M edge ever needs padding
        a = jnp.pad(a, ((0, Mp - M), (0, 0)))

    grid = (Mp // tm,)
    bias2d = bias.astype(jnp.float32).reshape(1, N)
    out_itemsize = jnp.dtype(out_dtype).itemsize

    bytes_accessed = (
        Mp * K * a.dtype.itemsize      # A read once
        + K * N * w.dtype.itemsize     # W read once (resident)
        + N * 4                        # bias
        + Mp * N * out_itemsize        # output write
    )
    # VMEM: double-buffered A stripe + resident W/bias + double-buffered out.
    vmem_need = (
        2 * tm * K * a.dtype.itemsize
        + K * N * w.dtype.itemsize
        + 2 * N * 4
        + 2 * tm * N * out_itemsize
    )
    # Stay inside v5e's 16 MiB scoped default when possible, and never exceed
    # v7x's 64 MiB physical VMEM.
    vmem_limit = int(min(64 * 1024 * 1024,
                         max(2 * vmem_need, 16 * 1024 * 1024)))

    out_p = pl.pallas_call(
        _proj_kernel,
        out_shape=jax.ShapeDtypeStruct((Mp, N), out_dtype),
        grid_spec=pltpu.PrefetchScalarGridSpec(
            num_scalar_prefetch=0,
            grid=grid,
            in_specs=[
                pl.BlockSpec((tm, K), lambda i: (i, 0)),   # streamed A stripe
                pl.BlockSpec((K, N), lambda i: (0, 0)),    # resident weight
                pl.BlockSpec((1, N), lambda i: (0, 0)),    # resident bias
            ],
            out_specs=pl.BlockSpec((tm, N), lambda i: (i, 0)),
        ),
        compiler_params=pltpu.CompilerParams(
            dimension_semantics=("parallel",),
            vmem_limit_bytes=vmem_limit,
        ),
        cost_estimate=pl.CostEstimate(
            flops=2 * Mp * K * N,
            bytes_accessed=bytes_accessed,
            transcendentals=0,
        ),
    )(a, w, bias2d)

    return out_p[:M] if Mp != M else out_p


@functools.partial(jax.jit, static_argnames=("patch_size",))
def patch_embedding_forward(x, weight, bias, patch_size):
    """Equivalent of PatchEmbedding.forward().

    Args:
      x:      (B, C, H, W) float32 input.
      weight: (embed_dim, C, ph, pw) Conv2d weight.
      bias:   (embed_dim,) Conv2d bias.
      patch_size: (ph, pw) with H % ph == 0, W % pw == 0.
    Returns:
      (B, num_patches, embed_dim), same dtype as x.
    """
    B, C, H, W = x.shape
    ph, pw = patch_size
    nH, nW = H // ph, W // pw
    embed_dim = weight.shape[0]

    # Channels-last patchify: the minor (lane) dim C never moves, so the 6-D
    # transpose is a cheap sublane-only shuffle.  Patch flatten order is
    # (kh, kw, c).
    xp = jnp.transpose(x, (0, 2, 3, 1))                 # (B, H, W, C)
    xp = xp.reshape(B, nH, ph, nW, pw, C)
    xp = jnp.transpose(xp, (0, 1, 3, 2, 4, 5))          # (B, nH, nW, ph, pw, C)
    patches = xp.reshape(B * nH * nW, ph * pw * C)      # (M, K)

    # Conv2d weight (E, C, ph, pw) -> (ph, pw, C, E) -> (K, N), matching the
    # (kh, kw, c) patch flatten order above.
    w2d = jnp.transpose(weight, (2, 3, 1, 0)).reshape(ph * pw * C, embed_dim)

    # bf16 on the MXU (f32 accumulation inside the kernel); bias stays f32.
    out = _proj_matmul(
        patches.astype(jnp.bfloat16),
        w2d.astype(jnp.bfloat16),
        bias,
        out_dtype=x.dtype,
    )
    return out.reshape(B, nH * nW, embed_dim)


if __name__ == "__main__":
    # Small deterministic config consistent with the module defaults
    # (patch_size = (16, 8)).
    patch_size = (16, 8)
    B, C, H, W = 2, 4, 32, 16          # -> 2x2 = 4 patches per image
    embed_dim = 32

    key = jax.random.PRNGKey(0)
    kx, kw, kb = jax.random.split(key, 3)

    x = jax.random.normal(kx, (B, C, H, W), dtype=jnp.float32)
    weight = jax.random.normal(
        kw, (embed_dim, C, patch_size[0], patch_size[1]), dtype=jnp.float32
    ) * 0.05
    bias = jax.random.normal(kb, (embed_dim,), dtype=jnp.float32) * 0.05

    out = jax.block_until_ready(
        patch_embedding_forward(x, weight, bias, patch_size)
    )

    # Independent f32 reference: the actual strided convolution, flattened and
    # transposed exactly like the PyTorch forward.
    ref = jax.lax.conv_general_dilated(
        x, weight, window_strides=patch_size, padding="VALID",
        dimension_numbers=("NCHW", "OIHW", "NCHW"),
    ) + bias.reshape(1, -1, 1, 1)
    ref = ref.reshape(B, embed_dim, -1).transpose(0, 2, 1)

    assert out.shape == (
        B, (H // patch_size[0]) * (W // patch_size[1]), embed_dim
    ), out.shape
    # bf16 inputs + f32 accumulation -> slightly looser tolerance than pure f32.
    assert jnp.allclose(out, ref, rtol=2e-2, atol=2e-2), (
        float(jnp.max(jnp.abs(out - ref)))
    )

    print("KERNEL_OK")
</pallas_src>

<mosaic_0001>
module attributes {stable_mosaic.version = 11 : i64} {
  func.func @_proj_kernel(%arg0: i32, %arg1: memref<8x512xbf16, #tpu.memory_space<vmem>>, %arg2: memref<512x32xbf16, #tpu.memory_space<vmem>>, %arg3: memref<1x32xf32, #tpu.memory_space<vmem>>, %arg4: memref<8x32xf32, #tpu.memory_space<vmem>>) attributes {dimension_semantics = [#tpu.dimension_semantics<parallel>], iteration_bounds = array<i64: 1>, scalar_prefetch = 0 : i64, scratch_operands = 0 : i64, tpu.core_type = #tpu.core_type<tc>, window_params = [{transform_indices = @transform_0, window_bounds = array<i64: 8, 512>}, {pipeline_mode = #tpu.pipeline_mode<synchronous>, transform_indices = @transform_1, window_bounds = array<i64: 512, 32>}, {pipeline_mode = #tpu.pipeline_mode<synchronous>, transform_indices = @transform_2, window_bounds = array<i64: 1, 32>}, {transform_indices = @transform_3, window_bounds = array<i64: 8, 32>}]} {
    %c0 = arith.constant 0 : index
    %c0_0 = arith.constant 0 : index
    %0 = vector.load %arg1[%c0, %c0_0] : memref<8x512xbf16, #tpu.memory_space<vmem>>, vector<8x512xbf16>
    %c0_1 = arith.constant 0 : index
    %c0_2 = arith.constant 0 : index
    %1 = vector.load %arg2[%c0_1, %c0_2] : memref<512x32xbf16, #tpu.memory_space<vmem>>, vector<512x32xbf16>
    %cst = arith.constant dense<0.000000e+00> : vector<8x32xf32>
    %2 = tpu.matmul %0, %1, %cst {dimension_numbers = #tpu.dot_dimension_numbers<[1], [0], [0], [1], [0, 0, 1, 1], [], []>} : vector<8x512xbf16>, vector<512x32xbf16>, vector<8x32xf32> -> vector<8x32xf32>
    %c0_3 = arith.constant 0 : index
    %c0_4 = arith.constant 0 : index
    %3 = vector.load %arg3[%c0_3, %c0_4] : memref<1x32xf32, #tpu.memory_space<vmem>>, vector<1x32xf32>
    %4 = vector.broadcast %3 : vector<1x32xf32> to vector<8x32xf32>
    %5 = arith.addf %2, %4 : vector<8x32xf32>
    %c0_5 = arith.constant 0 : index
    %c0_6 = arith.constant 0 : index
    %6 = vector.load %arg4[%c0_5, %c0_6] : memref<8x32xf32, #tpu.memory_space<vmem>>, vector<8x32xf32>
    tpu.vector_store %arg4[%c0_5, %c0_6], %5 {strides = array<i32>} : memref<8x32xf32, #tpu.memory_space<vmem>>, vector<8x32xf32>,
    return
  }
  func.func @transform_0(%arg0: i32) -> (i32, i32) {
    %c0_i32 = arith.constant 0 : i32
    %c0_i32_0 = arith.constant 0 : i32
    return %arg0, %c0_i32 : i32, i32
  }
  func.func @transform_1(%arg0: i32) -> (i32, i32) {
    %c0_i32 = arith.constant 0 : i32
    %c0_i32_0 = arith.constant 0 : i32
    %c0_i32_1 = arith.constant 0 : i32
    return %c0_i32, %c0_i32_0 : i32, i32
  }
  func.func @transform_2(%arg0: i32) -> (i32, i32) {
    %c0_i32 = arith.constant 0 : i32
    %c0_i32_0 = arith.constant 0 : i32
    %c0_i32_1 = arith.constant 0 : i32
    return %c0_i32, %c0_i32_0 : i32, i32
  }
  func.func @transform_3(%arg0: i32) -> (i32, i32) {
    %c0_i32 = arith.constant 0 : i32
    %c0_i32_0 = arith.constant 0 : i32
    return %arg0, %c0_i32 : i32, i32
  }
}

</mosaic_0001>

<bundles_post_ra>
// kernel: patch_embedding_forward.1
= control target key start
LH: loop header
LB: loop body
LE: loop exit
PB: predicated region body
PF: predicated region fallthrough
CT: control target
= control target key end

     0   :  { %s671_s0 = inlined_call_operand.vmem [shape: bf16[8,512], index: 0, kind: input, shape index: {}]   ;;  %s672_s1 = inlined_call_operand.vmem [shape: bf16[512,32], index: 1, kind: input, shape index: {}]   ;;  %s673_s2 = inlined_call_operand.vmem [shape: f32[1,32], index: 2, kind: input, shape index: {}]   ;;  %s674_s3 = inlined_call_operand.hbm [shape: f32[8,32], index: 3, kind: output, shape index: {}]  }
   0x1   :  { %v473_v0 = vld [vmem:[%s672_s1 + $0x40] sm:$0xff]   ;;  %v477_v4 = vld [vmem:[%s672_s1 + $0x48] sm:$0xff]   ;;  %v481_v8 = vld [vmem:[%s672_s1 + $0x50] sm:$0xff]  }
   0x2   :  { %v474_v1 = vld [vmem:[%s672_s1 + $0xc0] sm:$0xff]   ;;  %428 = vmatprep.subr.bf16.mxu0 %v473_v0  ;;  %v478_v5 = vld [vmem:[%s672_s1 + $0xc8] sm:$0xff]   ;;  %v482_v9 = vld [vmem:[%s672_s1 + $0xd0] sm:$0xff]  }
   0x3   :  { %v475_v2 = vld [vmem:[%s672_s1] sm:$0xff]   ;;  %450 = vmatprep.subr.bf16.mxu1 %v474_v1  ;;  %v479_v6 = vld [vmem:[%s672_s1 + $0x8] sm:$0xff]   ;;  %v483_v10 = vld [vmem:[%s672_s1 + $0x10] sm:$0xff]  }
   0x4   :  { %v476_v3 = vld [vmem:[%s672_s1 + $0x80] sm:$0xff]   ;;  %429 = vmatpush3.bf16.msra.mxu0 %v475_v2  ;;  %v480_v7 = vld [vmem:[%s672_s1 + $0x88] sm:$0xff]   ;;  %v484_v11 = vld [vmem:[%s672_s1 + $0x90] sm:$0xff]  }
   0x5   :  { %451 = vmatpush3.bf16.msra.mxu1 %v476_v3  ;;  %430 = vmatprep.subr.bf16.mxu0 %v477_v4  ;;  %v485_v12 = vld [vmem:[%s672_s1 + $0x58] sm:$0xff]   ;;  %v489_v16 = vld [vmem:[%s672_s1 + $0x60] sm:$0xff]   ;;  %v493_v20 = vld [vmem:[%s672_s1 + $0x68] sm:$0xff]  }
   0x6   :  { %452 = vmatprep.subr.bf16.mxu1 %v478_v5  ;;  %v486_v13 = vld [vmem:[%s672_s1 + $0xd8] sm:$0xff]   ;;  %v490_v17 = vld [vmem:[%s672_s1 + $0xe0] sm:$0xff]   ;;  %v494_v21 = vld [vmem:[%s672_s1 + $0xe8] sm:$0xff]  }
   0x7   :  { %v487_v14 = vld [vmem:[%s672_s1 + $0x18] sm:$0xff]   ;;  %v491_v18 = vld [vmem:[%s672_s1 + $0x20] sm:$0xff]   ;;  %v495_v22 = vld [vmem:[%s672_s1 + $0x28] sm:$0xff]  }
   0x8   :  { %431 = vmatpush3.bf16.msra.mxu0 %v479_v6  ;;  %v488_v15 = vld [vmem:[%s672_s1 + $0x98] sm:$0xff]   ;;  %v492_v19 = vld [vmem:[%s672_s1 + $0xa0] sm:$0xff]   ;;  %v496_v23 = vld [vmem:[%s672_s1 + $0xa8] sm:$0xff]  }
   0x9   :  { %453 = vmatpush3.bf16.msra.mxu1 %v480_v7  ;;  %432 = vmatprep.subr.bf16.mxu0 %v481_v8  ;;  %v497_v24 = vld [vmem:[%s672_s1 + $0x70] sm:$0xff]   ;;  %v501_v28 = vld [vmem:[%s672_s1 + $0x78] sm:$0xff]   ;;  %v16_v32 = vld [vmem:[%s671_s0] sm:$0xff] }
   0xa   :  { %454 = vmatprep.subr.bf16.mxu1 %v482_v9  ;;  %v498_v25 = vld [vmem:[%s672_s1 + $0xf0] sm:$0xff]   ;;  %v502_v29 = vld [vmem:[%s672_s1 + $0xf8] sm:$0xff]   ;;  %v17_v33 = vld [vmem:[%s671_s0 + $0x8] sm:$0xff] }
   0xb   :  { %v499_v26 = vld [vmem:[%s672_s1 + $0x30] sm:$0xff]   ;;  %v503_v30 = vld [vmem:[%s672_s1 + $0x38] sm:$0xff]  }
   0xc   :  { %433 = vmatpush3.bf16.msra.mxu0 %v483_v10  ;;  %v500_v27 = vld [vmem:[%s672_s1 + $0xb0] sm:$0xff]   ;;  %v504_v31 = vld [vmem:[%s672_s1 + $0xb8] sm:$0xff]  }
   0xd   :  { %455 = vmatpush3.bf16.msra.mxu1 %v484_v11  ;;  %434 = vmatprep.subr.bf16.mxu0 %v485_v12 }
   0xe   :  { %456 = vmatprep.subr.bf16.mxu1 %v486_v13 }
  0x10   :  { %435 = vmatpush3.bf16.msra.mxu0 %v487_v14 }
  0x11   :  { %457 = vmatpush3.bf16.msra.mxu1 %v488_v15  ;;  %436 = vmatprep.subr.bf16.mxu0 %v489_v16 }
  0x12   :  { %458 = vmatprep.subr.bf16.mxu1 %v490_v17 }
  0x14   :  { %437 = vmatpush3.bf16.msra.mxu0 %v491_v18 }
  0x15   :  { %459 = vmatpush3.bf16.msra.mxu1 %v492_v19  ;;  %438 = vmatprep.subr.bf16.mxu0 %v493_v20 }
  0x16   :  { %460 = vmatprep.subr.bf16.mxu1 %v494_v21 }
  0x18   :  { %439 = vmatpush3.bf16.msra.mxu0 %v495_v22 }
  0x19   :  { %461 = vmatpush3.bf16.msra.mxu1 %v496_v23  ;;  %440 = vmatprep.subr.bf16.mxu0 %v497_v24 }
  0x1a   :  { %462 = vmatprep.subr.bf16.mxu1 %v498_v25 }
  0x1c   :  { %441 = vmatpush3.bf16.msra.mxu0 %v499_v26 }
  0x1d   :  { %463 = vmatpush3.bf16.msra.mxu1 %v500_v27  ;;  %442 = vmatprep.subr.bf16.mxu0 %v501_v28 }
  0x1e   :  { %464 = vmatprep.subr.bf16.mxu1 %v502_v29 }
  0x20   :  { %443 = vmatpush3.bf16.msra.mxu0 %v503_v30 }
  0x21   :  { %8 = vsyncpa [#allocation3], 0  ;;  %465 = vmatpush3.bf16.msra.mxu1 %v504_v31  ;;  %v392_v34 = vcombine.low %v16_v32, %v16_v32  ;;  %v393_v35 = vcombine.high %v16_v32, %v16_v32  ;;  %v394_v36 = vcombine.low %v17_v33, %v17_v33  ;;  %v395_v37 = vcombine.high %v17_v33, %v17_v33  ;;  %v391_v40 = vld [vmem:[%s673_s2] ss:$0 sm:$0xff]  ;;  %s533_s0 = smov [#allocation2]  }
  0x22   :  { %s383_s27 = sshll.u32 %s533_s0, 4  ;;  %vm375_vm0 = vcmask 261120   ;;  %s384_s27 = int_to_ptr.vmem [resolvable:$true] %s383_s27 }
  0x23   :  { %327 = vmatprep.mubr.bf16.mxu0 %v393_v35  ;;  %367 = vmatprep.mubr.bf16.mxu1 %v395_v37  ;;  %s509_s28 = scalar_lea.vmem %s384_s27, 128  ;;  %p514_p1 = scmp.lt.s32.totalorder %s384_s27, %s384_s27 }
  0x24   :  { %328 = vmatmul.mubr.bf16.vlgmr.msra.gmra.mrb[0].mxu0 %v392_v34  ;;  %368 = vmatmul.mubr.bf16.vlgmr.msra.gmra.mrb[0].mxu1 %v394_v36  ;;  %p510_p0 = scmp.ne.s32.totalorder %s384_s27, %s509_s28  ;;  %p515_p2 = scmp.lt.s32.totalorder %s509_s28, %s509_s28 }
  0x26   :  { %p516_p3 = por %p515_p2, %p514_p1 }
  0x28   :  { %p517_p4 = pnand %p516_p3, %p510_p0 }
  0xf7   :  { %v444_v38 = vpop.f32.mrb[0].mxu0  ;;  %v466_v39 = vpop.f32.mrb[0].mxu1 }
  0xf8   :  { %v445_v41 = vpop.f32.mrb[1].mxu0  ;;  %v467_v42 = vpop.f32.mrb[1].mxu1 }
  0xf9   :  { %v446_v43 = vadd.f32 %v445_v41, %v444_v38  ;;  %v468_v44 = vadd.f32 %v467_v42, %v466_v39  ;;  %v447_v45 = vpop.f32.mrb[2].mxu0  ;;  %v469_v46 = vpop.f32.mrb[2].mxu1 }
  0xfa   :  { %v448_v47 = vpop.f32.mrb[3].mxu0  ;;  %v470_v48 = vpop.f32.mrb[3].mxu1 }
  0xfb   :  { %v330_v49 = vadd.f32 %v446_v43, %v391_v40 }
  0xfd   :  { %v370_v50 = vadd.f32 %v468_v44, %v330_v49 }
  0xff   :  { %376 = vst.msk [vmem:[#allocation2] sm:$0xff] %vm375_vm0, %v370_v50 }
 0x100   :  { %520 = shalt.err (!%p517_p4)
}
 0x101   :  { %s521_s30 = scalar_lea.hbm %s674_s3, 128 }
 0x102   :  { %p522_p5 = scmp.ne.s32.totalorder %s674_s3, %s521_s30  ;;  %p525_p6 = scmp.lt.u32.totalorder %s521_s30, %s674_s3 }
 0x104   :  { %p527_p7 = pnand %p525_p6, %p522_p5 }
 0x106   :  { %530 = shalt.err (!%p527_p7)
}
 0x107   :  { %386 = dma.vmem_to_hbm [thread:$0]  %s384_s27, 128, %s674_s3, [#allocation3]  }
 0x108   :  { %531 = dma.done.wait [#allocation3], 128  }
 0x109   :  { %532 = vsyncadd [#allocation3], 4294967168 }
 0x10a   :  { %390 = vsyncpa [#allocation3], 1 }

</bundles_post_ra>
